<compile_context>
chip_gen: v6e
topology: v6e:2x2x1
jax: 0.10.0
libtpu: 0.0.40
codegen_flags: <defaults>
</compile_context>

<pallas_src>
import functools

import jax
import jax.numpy as jnp
import numpy as np
from jax.experimental import pallas as pl
from jax.experimental.pallas import tpu as pltpu


def _deepar_kernel(x_ref, wih_ref, whh_ref, bg_ref, wh_ref, bh_ref,
                   out_ref, hs_sc, *, steps, hidden_size, bp):
    Tm1, H, Bp = steps, hidden_size, bp

    # --- hoisted input projection: one matmul for all timesteps -------------
    # (Tm1*Bp, F) @ (F, 4H) + (1, 4H)  ->  (Tm1*Bp, 4H), time-major rows.
    # Per-step slices below are at offsets t*Bp (multiples of 8 sublanes), so
    # each slice is exactly one aligned vreg row-group.
    x_proj = (jnp.dot(x_ref[...], wih_ref[...],
                      preferred_element_type=jnp.float32)
              + bg_ref[...])
    whh = whh_ref[...]                                   # (H, 4H), resident

    h = jnp.zeros((Bp, H), jnp.float32)
    c = jnp.zeros((Bp, H), jnp.float32)

    # --- serial LSTM recurrence, fully unrolled (Tm1 is small) --------------
    for t in range(Tm1):
        if t == 0:
            gates = x_proj[0:Bp, :]                      # h == 0 -> skip h@Whh
        else:
            gates = (x_proj[t * Bp:(t + 1) * Bp, :]
                     + jnp.dot(h, whh, preferred_element_type=jnp.float32))

        # One sigmoid over the full (Bp, 4H) pre-activation vreg.  The g-gate
        # columns were pre-scaled by 2 in parameter prep, so
        #   2*sigmoid(2*z_g) - 1 == tanh(z_g)
        # and only tanh(c) remains as a second dependent transcendental.
        s = jax.nn.sigmoid(gates)
        i_g = s[:, 0 * H:1 * H]
        f_g = s[:, 1 * H:2 * H]
        g_g = 2.0 * s[:, 2 * H:3 * H] - 1.0
        o_g = s[:, 3 * H:4 * H]

        c = f_g * c + i_g * g_g
        h = o_g * jnp.tanh(c)
        hs_sc[t * Bp:(t + 1) * Bp, :] = h                # sublane-aligned store

    # --- batched output heads: one matmul + one elementwise pass + one store
    # wh_ref is [W_mu^T | W_alpha^T | 0-pad] padded to 128 lanes, so the
    # epilogue store is a single unmasked lane-dense vst.
    heads = (jnp.dot(hs_sc[...], wh_ref[...],
                     preferred_element_type=jnp.float32)
             + bh_ref[...])                              # (Tm1*Bp, 128)
    # .clamp(min=0) from the reference is a no-op: softplus(.) + 1e-6 > 0.
    out_ref[...] = jax.nn.softplus(heads) + 1e-6


def prepare_deepar_params(params):
    """One-time parameter preparation (hoisted out of the per-call path)."""
    H = params["w_hh"].shape[1]
    N = params["w_mu"].shape[0]

    # Fold the 2x tanh-via-sigmoid scale into the g-gate columns / bias.
    g_scale = jnp.ones((4 * H,), jnp.float32).at[2 * H:3 * H].set(2.0)
    wih_t = params["w_ih"].T.astype(jnp.float32) * g_scale[None, :]   # (F, 4H)
    whh_t = params["w_hh"].T.astype(jnp.float32) * g_scale[None, :]   # (H, 4H)
    b_gates = ((params["b_ih"] + params["b_hh"]).astype(jnp.float32)
               * g_scale)[None, :]                                    # (1, 4H)

    # Concatenated heads, zero-padded to a lane-dense (>=128) output width.
    w_heads = jnp.concatenate([params["w_mu"].T, params["w_alpha"].T],
                              axis=1).astype(jnp.float32)             # (H, 2N)
    b_heads = jnp.concatenate(
        [params["b_mu"], params["b_alpha"]]).astype(jnp.float32)[None, :]
    out_lanes = max(128, -(-2 * N // 128) * 128)
    w_heads = jnp.pad(w_heads, ((0, 0), (0, out_lanes - 2 * N)))
    b_heads = jnp.pad(b_heads, ((0, 0), (0, out_lanes - 2 * N)))
    return (wih_t, whh_t, b_gates, w_heads, b_heads)


@functools.partial(jax.jit, static_argnames=("num_nodes",))
def deepar_forward(x_hist, prep, *, num_nodes):
    """Training-mode forward: x_hist [B, T, N] -> (mus, alphas) [B, T-1, N]."""
    wih_t, whh_t, b_gates, w_heads, b_heads = prep
    B, T, _ = x_hist.shape
    Tm1 = T - 1
    H = whh_t.shape[0]
    out_lanes = w_heads.shape[1]
    Bp = -(-B // 8) * 8                                  # batch padded to sublane tile

    # lstm_input = x_hist[:, :-1, :], time-major, batch padded to Bp rows and
    # flattened to 2-D so the kernel projects all timesteps with one matmul
    # and reads each step with an aligned static slice.  (Fused under jit.)
    x_lag = jnp.transpose(x_hist[:, :-1, :], (1, 0, 2)).astype(jnp.float32)
    x_pad = jnp.pad(x_lag, ((0, 0), (0, Bp - B), (0, 0)))         # (Tm1, Bp, F)
    x2d = x_pad.reshape(Tm1 * Bp, -1)                             # (Tm1*Bp, F)
    F_ = x2d.shape[1]

    kernel = functools.partial(_deepar_kernel, steps=Tm1, hidden_size=H, bp=Bp)

    out2d = pl.pallas_call(
        kernel,
        out_shape=jax.ShapeDtypeStruct((Tm1 * Bp, out_lanes), jnp.float32),
        grid=(1,),
        in_specs=[
            pl.BlockSpec((Tm1 * Bp, F_), lambda i: (0, 0)),     # x (time-major)
            pl.BlockSpec((F_, 4 * H), lambda i: (0, 0)),        # W_ih^T (g x2)
            pl.BlockSpec((H, 4 * H), lambda i: (0, 0)),         # W_hh^T (g x2)
            pl.BlockSpec((1, 4 * H), lambda i: (0, 0)),         # b_ih+b_hh (g x2)
            pl.BlockSpec((H, out_lanes), lambda i: (0, 0)),     # [W_mu^T|W_a^T|0]
            pl.BlockSpec((1, out_lanes), lambda i: (0, 0)),     # [b_mu|b_a|0]
        ],
        out_specs=pl.BlockSpec((Tm1 * Bp, out_lanes), lambda i: (0, 0)),
        scratch_shapes=[
            pltpu.VMEM((Tm1 * Bp, H), jnp.float32),   # per-step hidden states
        ],
        compiler_params=pltpu.CompilerParams(
            dimension_semantics=("arbitrary",)),
    )(x2d, wih_t, whh_t, b_gates, w_heads, b_heads)

    # (Tm1*Bp, 128) -> valid (B, Tm1, 2N) block, then split heads (fused by XLA).
    out = out2d.reshape(Tm1, Bp, out_lanes)[:, :B, :2 * num_nodes]
    out = jnp.transpose(out, (1, 0, 2))                           # (B, Tm1, 2N)
    return out[:, :, :num_nodes], out[:, :, num_nodes:]


def deepar_forward_ref(x_hist, params):
    """Pure-JAX reference (lax.scan LSTM) used to validate the kernel."""
    x_lag = x_hist[:, :-1, :].astype(jnp.float32)          # (B, T-1, F)
    B = x_lag.shape[0]
    H = params["w_hh"].shape[1]

    def step(carry, x_t):
        h, c = carry
        gates = (x_t @ params["w_ih"].T + params["b_ih"]
                 + h @ params["w_hh"].T + params["b_hh"])
        i_g, f_g, g_g, o_g = jnp.split(gates, 4, axis=-1)
        i_g = jax.nn.sigmoid(i_g)
        f_g = jax.nn.sigmoid(f_g)
        g_g = jnp.tanh(g_g)
        o_g = jax.nn.sigmoid(o_g)
        c = f_g * c + i_g * g_g
        h = o_g * jnp.tanh(c)
        return (h, c), h

    init = (jnp.zeros((B, H), jnp.float32), jnp.zeros((B, H), jnp.float32))
    _, hs = jax.lax.scan(step, init, jnp.transpose(x_lag, (1, 0, 2)))
    hs = jnp.transpose(hs, (1, 0, 2))                       # (B, T-1, H)

    mu = jax.nn.softplus(hs @ params["w_mu"].T + params["b_mu"]) + 1e-6
    al = jax.nn.softplus(hs @ params["w_alpha"].T + params["b_alpha"]) + 1e-6
    return jnp.maximum(mu, 0.0), al


def init_params(key, input_size_per_node, hidden_size, num_nodes):
    """Deterministic init mimicking PyTorch defaults (uniform(-k, k), k=1/sqrt(H))."""
    feature_size = input_size_per_node * num_nodes
    H = hidden_size
    k = 1.0 / np.sqrt(H)
    keys = jax.random.split(key, 8)
    u = lambda kk, shape: jax.random.uniform(kk, shape, jnp.float32, -k, k)
    return {
        "w_ih": u(keys[0], (4 * H, feature_size)),
        "w_hh": u(keys[1], (4 * H, H)),
        "b_ih": u(keys[2], (4 * H,)),
        "b_hh": u(keys[3], (4 * H,)),
        "w_mu": u(keys[4], (num_nodes, H)),
        "b_mu": u(keys[5], (num_nodes,)),
        "w_alpha": u(keys[6], (num_nodes, H)),
        "b_alpha": u(keys[7], (num_nodes,)),
    }


if __name__ == "__main__":
    # Model config: input_size_per_node=1, hidden=32, num_nodes=4,
    # num_layers=1, pred_horizon=4.  Input x_hist: [batch=2, T=9, num_nodes=4].
    B, T, N, H = 2, 9, 4, 32
    key = jax.random.PRNGKey(0)
    k_param, k_x = jax.random.split(key)

    params = init_params(k_param, input_size_per_node=1, hidden_size=H, num_nodes=N)
    x_hist = jax.random.uniform(k_x, (B, T, N), jnp.float32, 0.0, 5.0)

    prep = prepare_deepar_params(params)            # one-time, off the hot path

    mus, alphas = jax.block_until_ready(
        deepar_forward(x_hist, prep, num_nodes=N))
    mus_ref, alphas_ref = jax.block_until_ready(deepar_forward_ref(x_hist, params))

    assert mus.shape == (B, T - 1, N) and alphas.shape == (B, T - 1, N)
    np.testing.assert_allclose(np.asarray(mus), np.asarray(mus_ref),
                               rtol=1e-5, atol=1e-5)
    np.testing.assert_allclose(np.asarray(alphas), np.asarray(alphas_ref),
                               rtol=1e-5, atol=1e-5)
    print("KERNEL_OK")
</pallas_src>

<mosaic_0001>
module attributes {stable_mosaic.version = 11 : i64} {
  func.func @_deepar_kernel(%arg0: i32, %arg1: memref<64x4xf32, #tpu.memory_space<vmem>>, %arg2: memref<4x128xf32, #tpu.memory_space<vmem>>, %arg3: memref<32x128xf32, #tpu.memory_space<vmem>>, %arg4: memref<1x128xf32, #tpu.memory_space<vmem>>, %arg5: memref<32x128xf32, #tpu.memory_space<vmem>>, %arg6: memref<1x128xf32, #tpu.memory_space<vmem>>, %arg7: memref<64x128xf32, #tpu.memory_space<vmem>>, %arg8: memref<64x32xf32, #tpu.memory_space<vmem>>) attributes {dimension_semantics = [#tpu.dimension_semantics<arbitrary>], iteration_bounds = array<i64: 1>, scalar_prefetch = 0 : i64, scratch_operands = 1 : i64, tpu.core_type = #tpu.core_type<tc>, window_params = [{pipeline_mode = #tpu.pipeline_mode<synchronous>, transform_indices = @transform_0, window_bounds = array<i64: 64, 4>}, {pipeline_mode = #tpu.pipeline_mode<synchronous>, transform_indices = @transform_1, window_bounds = array<i64: 4, 128>}, {pipeline_mode = #tpu.pipeline_mode<synchronous>, transform_indices = @transform_2, window_bounds = array<i64: 32, 128>}, {pipeline_mode = #tpu.pipeline_mode<synchronous>, transform_indices = @transform_3, window_bounds = array<i64: 1, 128>}, {pipeline_mode = #tpu.pipeline_mode<synchronous>, transform_indices = @transform_4, window_bounds = array<i64: 32, 128>}, {pipeline_mode = #tpu.pipeline_mode<synchronous>, transform_indices = @transform_5, window_bounds = array<i64: 1, 128>}, {pipeline_mode = #tpu.pipeline_mode<synchronous>, transform_indices = @transform_6, window_bounds = array<i64: 64, 128>}]} {
    %c0 = arith.constant 0 : index
    %c0_0 = arith.constant 0 : index
    %0 = vector.load %arg1[%c0, %c0_0] : memref<64x4xf32, #tpu.memory_space<vmem>>, vector<64x4xf32>
    %c0_1 = arith.constant 0 : index
    %c0_2 = arith.constant 0 : index
    %1 = vector.load %arg2[%c0_1, %c0_2] : memref<4x128xf32, #tpu.memory_space<vmem>>, vector<4x128xf32>
    %cst = arith.constant dense<0.000000e+00> : vector<64x128xf32>
    %2 = tpu.matmul %0, %1, %cst {dimension_numbers = #tpu.dot_dimension_numbers<[1], [0], [0], [1], [0, 0, 1, 1], [], []>} : vector<64x4xf32>, vector<4x128xf32>, vector<64x128xf32> -> vector<64x128xf32>
    %c0_3 = arith.constant 0 : index
    %c0_4 = arith.constant 0 : index
    %3 = vector.load %arg4[%c0_3, %c0_4] : memref<1x128xf32, #tpu.memory_space<vmem>>, vector<1x128xf32>
    %4 = vector.broadcast %3 : vector<1x128xf32> to vector<64x128xf32>
    %5 = arith.addf %2, %4 : vector<64x128xf32>
    %c0_5 = arith.constant 0 : index
    %c0_6 = arith.constant 0 : index
    %6 = vector.load %arg3[%c0_5, %c0_6] : memref<32x128xf32, #tpu.memory_space<vmem>>, vector<32x128xf32>
    %cst_7 = arith.constant 0.000000e+00 : f32
    %7 = vector.broadcast %cst_7 : f32 to vector<8x32xf32>
    %8 = vector.extract_strided_slice %5 {offsets = [0, 0], sizes = [8, 128], strides = [1, 1]} : vector<64x128xf32> to vector<8x128xf32>
    %9 = arith.negf %8 : vector<8x128xf32>
    %10 = math.exp %9 : vector<8x128xf32>
    %cst_8 = arith.constant 1.000000e+00 : f32
    %11 = vector.broadcast %cst_8 : f32 to vector<8x128xf32>
    %12 = arith.addf %11, %10 : vector<8x128xf32>
    %13 = arith.divf %11, %12 : vector<8x128xf32>
    %14 = vector.extract_strided_slice %13 {offsets = [0, 0], sizes = [8, 32], strides = [1, 1]} : vector<8x128xf32> to vector<8x32xf32>
    %15 = vector.extract_strided_slice %13 {offsets = [0, 32], sizes = [8, 32], strides = [1, 1]} : vector<8x128xf32> to vector<8x32xf32>
    %16 = vector.extract_strided_slice %13 {offsets = [0, 64], sizes = [8, 32], strides = [1, 1]} : vector<8x128xf32> to vector<8x32xf32>
    %cst_9 = arith.constant 2.000000e+00 : f32
    %17 = vector.broadcast %cst_9 : f32 to vector<8x32xf32>
    %18 = arith.mulf %17, %16 : vector<8x32xf32>
    %cst_10 = arith.constant 1.000000e+00 : f32
    %19 = vector.broadcast %cst_10 : f32 to vector<8x32xf32>
    %20 = arith.subf %18, %19 : vector<8x32xf32>
    %21 = vector.extract_strided_slice %13 {offsets = [0, 96], sizes = [8, 32], strides = [1, 1]} : vector<8x128xf32> to vector<8x32xf32>
    %22 = arith.mulf %15, %7 : vector<8x32xf32>
    %23 = arith.mulf %14, %20 : vector<8x32xf32>
    %24 = arith.addf %22, %23 : vector<8x32xf32>
    %25 = math.tanh %24 : vector<8x32xf32>
    %26 = arith.mulf %21, %25 : vector<8x32xf32>
    %c0_11 = arith.constant 0 : index
    %c0_12 = arith.constant 0 : index
    %27 = vector.load %arg8[%c0_11, %c0_12] : memref<64x32xf32, #tpu.memory_space<vmem>>, vector<8x32xf32>
    tpu.vector_store %arg8[%c0_11, %c0_12], %26 {strides = array<i32>} : memref<64x32xf32, #tpu.memory_space<vmem>>, vector<8x32xf32>,
    %28 = vector.extract_strided_slice %5 {offsets = [8, 0], sizes = [8, 128], strides = [1, 1]} : vector<64x128xf32> to vector<8x128xf32>
    %cst_13 = arith.constant dense<0.000000e+00> : vector<8x128xf32>
    %29 = tpu.matmul %26, %6, %cst_13 {dimension_numbers = #tpu.dot_dimension_numbers<[1], [0], [0], [1], [0, 0, 1, 1], [], []>} : vector<8x32xf32>, vector<32x128xf32>, vector<8x128xf32> -> vector<8x128xf32>
    %30 = arith.addf %28, %29 : vector<8x128xf32>
    %31 = arith.negf %30 : vector<8x128xf32>
    %32 = math.exp %31 : vector<8x128xf32>
    %cst_14 = arith.constant 1.000000e+00 : f32
    %33 = vector.broadcast %cst_14 : f32 to vector<8x128xf32>
    %34 = arith.addf %33, %32 : vector<8x128xf32>
    %35 = arith.divf %33, %34 : vector<8x128xf32>
    %36 = vector.extract_strided_slice %35 {offsets = [0, 0], sizes = [8, 32], strides = [1, 1]} : vector<8x128xf32> to vector<8x32xf32>
    %37 = vector.extract_strided_slice %35 {offsets = [0, 32], sizes = [8, 32], strides = [1, 1]} : vector<8x128xf32> to vector<8x32xf32>
    %38 = vector.extract_strided_slice %35 {offsets = [0, 64], sizes = [8, 32], strides = [1, 1]} : vector<8x128xf32> to vector<8x32xf32>
    %cst_15 = arith.constant 2.000000e+00 : f32
    %39 = vector.broadcast %cst_15 : f32 to vector<8x32xf32>
    %40 = arith.mulf %39, %38 : vector<8x32xf32>
    %cst_16 = arith.constant 1.000000e+00 : f32
    %41 = vector.broadcast %cst_16 : f32 to vector<8x32xf32>
    %42 = arith.subf %40, %41 : vector<8x32xf32>
    %43 = vector.extract_strided_slice %35 {offsets = [0, 96], sizes = [8, 32], strides = [1, 1]} : vector<8x128xf32> to vector<8x32xf32>
    %44 = arith.mulf %37, %24 : vector<8x32xf32>
    %45 = arith.mulf %36, %42 : vector<8x32xf32>
    %46 = arith.addf %44, %45 : vector<8x32xf32>
    %47 = math.tanh %46 : vector<8x32xf32>
    %48 = arith.mulf %43, %47 : vector<8x32xf32>
    %c8 = arith.constant 8 : index
    %c0_17 = arith.constant 0 : index
    %49 = vector.load %arg8[%c8, %c0_17] : memref<64x32xf32, #tpu.memory_space<vmem>>, vector<8x32xf32>
    tpu.vector_store %arg8[%c8, %c0_17], %48 {strides = array<i32>} : memref<64x32xf32, #tpu.memory_space<vmem>>, vector<8x32xf32>,
    %50 = vector.extract_strided_slice %5 {offsets = [16, 0], sizes = [8, 128], strides = [1, 1]} : vector<64x128xf32> to vector<8x128xf32>
    %cst_18 = arith.constant dense<0.000000e+00> : vector<8x128xf32>
    %51 = tpu.matmul %48, %6, %cst_18 {dimension_numbers = #tpu.dot_dimension_numbers<[1], [0], [0], [1], [0, 0, 1, 1], [], []>} : vector<8x32xf32>, vector<32x128xf32>, vector<8x128xf32> -> vector<8x128xf32>
    %52 = arith.addf %50, %51 : vector<8x128xf32>
    %53 = arith.negf %52 : vector<8x128xf32>
    %54 = math.exp %53 : vector<8x128xf32>
    %cst_19 = arith.constant 1.000000e+00 : f32
    %55 = vector.broadcast %cst_19 : f32 to vector<8x128xf32>
    %56 = arith.addf %55, %54 : vector<8x128xf32>
    %57 = arith.divf %55, %56 : vector<8x128xf32>
    %58 = vector.extract_strided_slice %57 {offsets = [0, 0], sizes = [8, 32], strides = [1, 1]} : vector<8x128xf32> to vector<8x32xf32>
    %59 = vector.extract_strided_slice %57 {offsets = [0, 32], sizes = [8, 32], strides = [1, 1]} : vector<8x128xf32> to vector<8x32xf32>
    %60 = vector.extract_strided_slice %57 {offsets = [0, 64], sizes = [8, 32], strides = [1, 1]} : vector<8x128xf32> to vector<8x32xf32>
    %cst_20 = arith.constant 2.000000e+00 : f32
    %61 = vector.broadcast %cst_20 : f32 to vector<8x32xf32>
    %62 = arith.mulf %61, %60 : vector<8x32xf32>
    %cst_21 = arith.constant 1.000000e+00 : f32
    %63 = vector.broadcast %cst_21 : f32 to vector<8x32xf32>
    %64 = arith.subf %62, %63 : vector<8x32xf32>
    %65 = vector.extract_strided_slice %57 {offsets = [0, 96], sizes = [8, 32], strides = [1, 1]} : vector<8x128xf32> to vector<8x32xf32>
    %66 = arith.mulf %59, %46 : vector<8x32xf32>
    %67 = arith.mulf %58, %64 : vector<8x32xf32>
    %68 = arith.addf %66, %67 : vector<8x32xf32>
    %69 = math.tanh %68 : vector<8x32xf32>
    %70 = arith.mulf %65, %69 : vector<8x32xf32>
    %c16 = arith.constant 16 : index
    %c0_22 = arith.constant 0 : index
    %71 = vector.load %arg8[%c16, %c0_22] : memref<64x32xf32, #tpu.memory_space<vmem>>, vector<8x32xf32>
    tpu.vector_store %arg8[%c16, %c0_22], %70 {strides = array<i32>} : memref<64x32xf32, #tpu.memory_space<vmem>>, vector<8x32xf32>,
    %72 = vector.extract_strided_slice %5 {offsets = [24, 0], sizes = [8, 128], strides = [1, 1]} : vector<64x128xf32> to vector<8x128xf32>
    %cst_23 = arith.constant dense<0.000000e+00> : vector<8x128xf32>
    %73 = tpu.matmul %70, %6, %cst_23 {dimension_numbers = #tpu.dot_dimension_numbers<[1], [0], [0], [1], [0, 0, 1, 1], [], []>} : vector<8x32xf32>, vector<32x128xf32>, vector<8x128xf32> -> vector<8x128xf32>
    %74 = arith.addf %72, %73 : vector<8x128xf32>
    %75 = arith.negf %74 : vector<8x128xf32>
    %76 = math.exp %75 : vector<8x128xf32>
    %cst_24 = arith.constant 1.000000e+00 : f32
    %77 = vector.broadcast %cst_24 : f32 to vector<8x128xf32>
    %78 = arith.addf %77, %76 : vector<8x128xf32>
    %79 = arith.divf %77, %78 : vector<8x128xf32>
    %80 = vector.extract_strided_slice %79 {offsets = [0, 0], sizes = [8, 32], strides = [1, 1]} : vector<8x128xf32> to vector<8x32xf32>
    %81 = vector.extract_strided_slice %79 {offsets = [0, 32], sizes = [8, 32], strides = [1, 1]} : vector<8x128xf32> to vector<8x32xf32>
    %82 = vector.extract_strided_slice %79 {offsets = [0, 64], sizes = [8, 32], strides = [1, 1]} : vector<8x128xf32> to vector<8x32xf32>
    %cst_25 = arith.constant 2.000000e+00 : f32
    %83 = vector.broadcast %cst_25 : f32 to vector<8x32xf32>
    %84 = arith.mulf %83, %82 : vector<8x32xf32>
    %cst_26 = arith.constant 1.000000e+00 : f32
    %85 = vector.broadcast %cst_26 : f32 to vector<8x32xf32>
    %86 = arith.subf %84, %85 : vector<8x32xf32>
    %87 = vector.extract_strided_slice %79 {offsets = [0, 96], sizes = [8, 32], strides = [1, 1]} : vector<8x128xf32> to vector<8x32xf32>
    %88 = arith.mulf %81, %68 : vector<8x32xf32>
    %89 = arith.mulf %80, %86 : vector<8x32xf32>
    %90 = arith.addf %88, %89 : vector<8x32xf32>
    %91 = math.tanh %90 : vector<8x32xf32>
    %92 = arith.mulf %87, %91 : vector<8x32xf32>
    %c24 = arith.constant 24 : index
    %c0_27 = arith.constant 0 : index
    %93 = vector.load %arg8[%c24, %c0_27] : memref<64x32xf32, #tpu.memory_space<vmem>>, vector<8x32xf32>
    tpu.vector_store %arg8[%c24, %c0_27], %92 {strides = array<i32>} : memref<64x32xf32, #tpu.memory_space<vmem>>, vector<8x32xf32>,
    %94 = vector.extract_strided_slice %5 {offsets = [32, 0], sizes = [8, 128], strides = [1, 1]} : vector<64x128xf32> to vector<8x128xf32>
    %cst_28 = arith.constant dense<0.000000e+00> : vector<8x128xf32>
    %95 = tpu.matmul %92, %6, %cst_28 {dimension_numbers = #tpu.dot_dimension_numbers<[1], [0], [0], [1], [0, 0, 1, 1], [], []>} : vector<8x32xf32>, vector<32x128xf32>, vector<8x128xf32> -> vector<8x128xf32>
    %96 = arith.addf %94, %95 : vector<8x128xf32>
    %97 = arith.negf %96 : vector<8x128xf32>
    %98 = math.exp %97 : vector<8x128xf32>
    %cst_29 = arith.constant 1.000000e+00 : f32
    %99 = vector.broadcast %cst_29 : f32 to vector<8x128xf32>
    %100 = arith.addf %99, %98 : vector<8x128xf32>
    %101 = arith.divf %99, %100 : vector<8x128xf32>
    %102 = vector.extract_strided_slice %101 {offsets = [0, 0], sizes = [8, 32], strides = [1, 1]} : vector<8x128xf32> to vector<8x32xf32>
    %103 = vector.extract_strided_slice %101 {offsets = [0, 32], sizes = [8, 32], strides = [1, 1]} : vector<8x128xf32> to vector<8x32xf32>
    %104 = vector.extract_strided_slice %101 {offsets = [0, 64], sizes = [8, 32], strides = [1, 1]} : vector<8x128xf32> to vector<8x32xf32>
    %cst_30 = arith.constant 2.000000e+00 : f32
    %105 = vector.broadcast %cst_30 : f32 to vector<8x32xf32>
    %106 = arith.mulf %105, %104 : vector<8x32xf32>
    %cst_31 = arith.constant 1.000000e+00 : f32
    %107 = vector.broadcast %cst_31 : f32 to vector<8x32xf32>
    %108 = arith.subf %106, %107 : vector<8x32xf32>
    %109 = vector.extract_strided_slice %101 {offsets = [0, 96], sizes = [8, 32], strides = [1, 1]} : vector<8x128xf32> to vector<8x32xf32>
    %110 = arith.mulf %103, %90 : vector<8x32xf32>
    %111 = arith.mulf %102, %108 : vector<8x32xf32>
    %112 = arith.addf %110, %111 : vector<8x32xf32>
    %113 = math.tanh %112 : vector<8x32xf32>
    %114 = arith.mulf %109, %113 : vector<8x32xf32>
    %c32 = arith.constant 32 : index
    %c0_32 = arith.constant 0 : index
    %115 = vector.load %arg8[%c32, %c0_32] : memref<64x32xf32, #tpu.memory_space<vmem>>, vector<8x32xf32>
    tpu.vector_store %arg8[%c32, %c0_32], %114 {strides = array<i32>} : memref<64x32xf32, #tpu.memory_space<vmem>>, vector<8x32xf32>,
    %116 = vector.extract_strided_slice %5 {offsets = [40, 0], sizes = [8, 128], strides = [1, 1]} : vector<64x128xf32> to vector<8x128xf32>
    %cst_33 = arith.constant dense<0.000000e+00> : vector<8x128xf32>
    %117 = tpu.matmul %114, %6, %cst_33 {dimension_numbers = #tpu.dot_dimension_numbers<[1], [0], [0], [1], [0, 0, 1, 1], [], []>} : vector<8x32xf32>, vector<32x128xf32>, vector<8x128xf32> -> vector<8x128xf32>
    %118 = arith.addf %116, %117 : vector<8x128xf32>
    %119 = arith.negf %118 : vector<8x128xf32>
    %120 = math.exp %119 : vector<8x128xf32>
    %cst_34 = arith.constant 1.000000e+00 : f32
    %121 = vector.broadcast %cst_34 : f32 to vector<8x128xf32>
    %122 = arith.addf %121, %120 : vector<8x128xf32>
    %123 = arith.divf %121, %122 : vector<8x128xf32>
    %124 = vector.extract_strided_slice %123 {offsets = [0, 0], sizes = [8, 32], strides = [1, 1]} : vector<8x128xf32> to vector<8x32xf32>
    %125 = vector.extract_strided_slice %123 {offsets = [0, 32], sizes = [8, 32], strides = [1, 1]} : vector<8x128xf32> to vector<8x32xf32>
    %126 = vector.extract_strided_slice %123 {offsets = [0, 64], sizes = [8, 32], strides = [1, 1]} : vector<8x128xf32> to vector<8x32xf32>
    %cst_35 = arith.constant 2.000000e+00 : f32
    %127 = vector.broadcast %cst_35 : f32 to vector<8x32xf32>
    %128 = arith.mulf %127, %126 : vector<8x32xf32>
    %cst_36 = arith.constant 1.000000e+00 : f32
    %129 = vector.broadcast %cst_36 : f32 to vector<8x32xf32>
    %130 = arith.subf %128, %129 : vector<8x32xf32>
    %131 = vector.extract_strided_slice %123 {offsets = [0, 96], sizes = [8, 32], strides = [1, 1]} : vector<8x128xf32> to vector<8x32xf32>
    %132 = arith.mulf %125, %112 : vector<8x32xf32>
    %133 = arith.mulf %124, %130 : vector<8x32xf32>
    %134 = arith.addf %132, %133 : vector<8x32xf32>
    %135 = math.tanh %134 : vector<8x32xf32>
    %136 = arith.mulf %131, %135 : vector<8x32xf32>
    %c40 = arith.constant 40 : index
    %c0_37 = arith.constant 0 : index
    %137 = vector.load %arg8[%c40, %c0_37] : memref<64x32xf32, #tpu.memory_space<vmem>>, vector<8x32xf32>
    tpu.vector_store %arg8[%c40, %c0_37], %136 {strides = array<i32>} : memref<64x32xf32, #tpu.memory_space<vmem>>, vector<8x32xf32>,
    %138 = vector.extract_strided_slice %5 {offsets = [48, 0], sizes = [8, 128], strides = [1, 1]} : vector<64x128xf32> to vector<8x128xf32>
    %cst_38 = arith.constant dense<0.000000e+00> : vector<8x128xf32>
    %139 = tpu.matmul %136, %6, %cst_38 {dimension_numbers = #tpu.dot_dimension_numbers<[1], [0], [0], [1], [0, 0, 1, 1], [], []>} : vector<8x32xf32>, vector<32x128xf32>, vector<8x128xf32> -> vector<8x128xf32>
    %140 = arith.addf %138, %139 : vector<8x128xf32>
    %141 = arith.negf %140 : vector<8x128xf32>
    %142 = math.exp %141 : vector<8x128xf32>
    %cst_39 = arith.constant 1.000000e+00 : f32
    %143 = vector.broadcast %cst_39 : f32 to vector<8x128xf32>
    %144 = arith.addf %143, %142 : vector<8x128xf32>
    %145 = arith.divf %143, %144 : vector<8x128xf32>
    %146 = vector.extract_strided_slice %145 {offsets = [0, 0], sizes = [8, 32], strides = [1, 1]} : vector<8x128xf32> to vector<8x32xf32>
    %147 = vector.extract_strided_slice %145 {offsets = [0, 32], sizes = [8, 32], strides = [1, 1]} : vector<8x128xf32> to vector<8x32xf32>
    %148 = vector.extract_strided_slice %145 {offsets = [0, 64], sizes = [8, 32], strides = [1, 1]} : vector<8x128xf32> to vector<8x32xf32>
    %cst_40 = arith.constant 2.000000e+00 : f32
    %149 = vector.broadcast %cst_40 : f32 to vector<8x32xf32>
    %150 = arith.mulf %149, %148 : vector<8x32xf32>
    %cst_41 = arith.constant 1.000000e+00 : f32
    %151 = vector.broadcast %cst_41 : f32 to vector<8x32xf32>
    %152 = arith.subf %150, %151 : vector<8x32xf32>
    %153 = vector.extract_strided_slice %145 {offsets = [0, 96], sizes = [8, 32], strides = [1, 1]} : vector<8x128xf32> to vector<8x32xf32>
    %154 = arith.mulf %147, %134 : vector<8x32xf32>
    %155 = arith.mulf %146, %152 : vector<8x32xf32>
    %156 = arith.addf %154, %155 : vector<8x32xf32>
    %157 = math.tanh %156 : vector<8x32xf32>
    %158 = arith.mulf %153, %157 : vector<8x32xf32>
    %c48 = arith.constant 48 : index
    %c0_42 = arith.constant 0 : index
    %159 = vector.load %arg8[%c48, %c0_42] : memref<64x32xf32, #tpu.memory_space<vmem>>, vector<8x32xf32>
    tpu.vector_store %arg8[%c48, %c0_42], %158 {strides = array<i32>} : memref<64x32xf32, #tpu.memory_space<vmem>>, vector<8x32xf32>,
    %160 = vector.extract_strided_slice %5 {offsets = [56, 0], sizes = [8, 128], strides = [1, 1]} : vector<64x128xf32> to vector<8x128xf32>
    %cst_43 = arith.constant dense<0.000000e+00> : vector<8x128xf32>
    %161 = tpu.matmul %158, %6, %cst_43 {dimension_numbers = #tpu.dot_dimension_numbers<[1], [0], [0], [1], [0, 0, 1, 1], [], []>} : vector<8x32xf32>, vector<32x128xf32>, vector<8x128xf32> -> vector<8x128xf32>
    %162 = arith.addf %160, %161 : vector<8x128xf32>
    %163 = arith.negf %162 : vector<8x128xf32>
    %164 = math.exp %163 : vector<8x128xf32>
    %cst_44 = arith.constant 1.000000e+00 : f32
    %165 = vector.broadcast %cst_44 : f32 to vector<8x128xf32>
    %166 = arith.addf %165, %164 : vector<8x128xf32>
    %167 = arith.divf %165, %166 : vector<8x128xf32>
    %168 = vector.extract_strided_slice %167 {offsets = [0, 0], sizes = [8, 32], strides = [1, 1]} : vector<8x128xf32> to vector<8x32xf32>
    %169 = vector.extract_strided_slice %167 {offsets = [0, 32], sizes = [8, 32], strides = [1, 1]} : vector<8x128xf32> to vector<8x32xf32>
    %170 = vector.extract_strided_slice %167 {offsets = [0, 64], sizes = [8, 32], strides = [1, 1]} : vector<8x128xf32> to vector<8x32xf32>
    %cst_45 = arith.constant 2.000000e+00 : f32
    %171 = vector.broadcast %cst_45 : f32 to vector<8x32xf32>
    %172 = arith.mulf %171, %170 : vector<8x32xf32>
    %cst_46 = arith.constant 1.000000e+00 : f32
    %173 = vector.broadcast %cst_46 : f32 to vector<8x32xf32>
    %174 = arith.subf %172, %173 : vector<8x32xf32>
    %175 = vector.extract_strided_slice %167 {offsets = [0, 96], sizes = [8, 32], strides = [1, 1]} : vector<8x128xf32> to vector<8x32xf32>
    %176 = arith.mulf %169, %156 : vector<8x32xf32>
    %177 = arith.mulf %168, %174 : vector<8x32xf32>
    %178 = arith.addf %176, %177 : vector<8x32xf32>
    %179 = math.tanh %178 : vector<8x32xf32>
    %180 = arith.mulf %175, %179 : vector<8x32xf32>
    %c56 = arith.constant 56 : index
    %c0_47 = arith.constant 0 : index
    %181 = vector.load %arg8[%c56, %c0_47] : memref<64x32xf32, #tpu.memory_space<vmem>>, vector<8x32xf32>
    tpu.vector_store %arg8[%c56, %c0_47], %180 {strides = array<i32>} : memref<64x32xf32, #tpu.memory_space<vmem>>, vector<8x32xf32>,
    %c0_48 = arith.constant 0 : index
    %c0_49 = arith.constant 0 : index
    %182 = vector.load %arg8[%c0_48, %c0_49] : memref<64x32xf32, #tpu.memory_space<vmem>>, vector<64x32xf32>
    %c0_50 = arith.constant 0 : index
    %c0_51 = arith.constant 0 : index
    %183 = vector.load %arg5[%c0_50, %c0_51] : memref<32x128xf32, #tpu.memory_space<vmem>>, vector<32x128xf32>
    %cst_52 = arith.constant dense<0.000000e+00> : vector<64x128xf32>
    %184 = tpu.matmul %182, %183, %cst_52 {dimension_numbers = #tpu.dot_dimension_numbers<[1], [0], [0], [1], [0, 0, 1, 1], [], []>} : vector<64x32xf32>, vector<32x128xf32>, vector<64x128xf32> -> vector<64x128xf32>
    %c0_53 = arith.constant 0 : index
    %c0_54 = arith.constant 0 : index
    %185 = vector.load %arg6[%c0_53, %c0_54] : memref<1x128xf32, #tpu.memory_space<vmem>>, vector<1x128xf32>
    %186 = vector.broadcast %185 : vector<1x128xf32> to vector<64x128xf32>
    %187 = arith.addf %184, %186 : vector<64x128xf32>
    %cst_55 = arith.constant 0.000000e+00 : f32
    %188 = vector.broadcast %cst_55 : f32 to vector<64x128xf32>
    %189 = arith.maximumf %187, %188 : vector<64x128xf32>
    %190 = vector.broadcast %cst_55 : f32 to vector<64x128xf32>
    %191 = arith.subf %187, %190 : vector<64x128xf32>
    %192 = arith.cmpf one, %191, %191 : vector<64x128xf32>
    %193 = vector.broadcast %cst_55 : f32 to vector<64x128xf32>
    %194 = arith.addf %187, %193 : vector<64x128xf32>
    %195 = math.absf %191 : vector<64x128xf32>
    %cst_56 = arith.constant 0.000000e+00 : f32
    %196 = vector.broadcast %cst_56 : f32 to vector<64x128xf32>
    %197 = arith.subf %196, %195 : vector<64x128xf32>
    %198 = math.exp %197 : vector<64x128xf32>
    %199 = math.log1p %198 : vector<64x128xf32>
    %200 = arith.addf %189, %199 : vector<64x128xf32>
    %201 = arith.select %192, %194, %200 : vector<64x128xi1>, vector<64x128xf32>
    %cst_57 = arith.constant 9.99999997E-7 : f32
    %202 = vector.broadcast %cst_57 : f32 to vector<64x128xf32>
    %203 = arith.addf %201, %202 : vector<64x128xf32>
    %c0_58 = arith.constant 0 : index
    %c0_59 = arith.constant 0 : index
    %204 = vector.load %arg7[%c0_58, %c0_59] : memref<64x128xf32, #tpu.memory_space<vmem>>, vector<64x128xf32>
    tpu.vector_store %arg7[%c0_58, %c0_59], %203 {strides = array<i32>} : memref<64x128xf32, #tpu.memory_space<vmem>>, vector<64x128xf32>,
    return
  }
  func.func @transform_0(%arg0: i32) -> (i32, i32) {
    %c0_i32 = arith.constant 0 : i32
    %c0_i32_0 = arith.constant 0 : i32
    %c0_i32_1 = arith.constant 0 : i32
    return %c0_i32, %c0_i32_0 : i32, i32
  }
  func.func @transform_1(%arg0: i32) -> (i32, i32) {
    %c0_i32 = arith.constant 0 : i32
    %c0_i32_0 = arith.constant 0 : i32
    %c0_i32_1 = arith.constant 0 : i32
    return %c0_i32, %c0_i32_0 : i32, i32
  }
  func.func @transform_2(%arg0: i32) -> (i32, i32) {
    %c0_i32 = arith.constant 0 : i32
    %c0_i32_0 = arith.constant 0 : i32
    %c0_i32_1 = arith.constant 0 : i32
    return %c0_i32, %c0_i32_0 : i32, i32
  }
  func.func @transform_3(%arg0: i32) -> (i32, i32) {
    %c0_i32 = arith.constant 0 : i32
    %c0_i32_0 = arith.constant 0 : i32
    %c0_i32_1 = arith.constant 0 : i32
    return %c0_i32, %c0_i32_0 : i32, i32
  }
  func.func @transform_4(%arg0: i32) -> (i32, i32) {
    %c0_i32 = arith.constant 0 : i32
    %c0_i32_0 = arith.constant 0 : i32
    %c0_i32_1 = arith.constant 0 : i32
    return %c0_i32, %c0_i32_0 : i32, i32
  }
  func.func @transform_5(%arg0: i32) -> (i32, i32) {
    %c0_i32 = arith.constant 0 : i32
    %c0_i32_0 = arith.constant 0 : i32
    %c0_i32_1 = arith.constant 0 : i32
    return %c0_i32, %c0_i32_0 : i32, i32
  }
  func.func @transform_6(%arg0: i32) -> (i32, i32) {
    %c0_i32 = arith.constant 0 : i32
    %c0_i32_0 = arith.constant 0 : i32
    %c0_i32_1 = arith.constant 0 : i32
    return %c0_i32, %c0_i32_0 : i32, i32
  }
}

</mosaic_0001>

<bundles_post_ra>
// kernel: deepar_forward.1
= control target key start
LH: loop header
LB: loop body
LE: loop exit
PB: predicated region body
PF: predicated region fallthrough
CT: control target
= control target key end

     0   :  { %vm64_vm0 = vcmask 1043456   ;;  %vm39_vm1 = vcmask 31744   ;;  %s1535_s29 = smov 32   ;;  %v1536_v20 = vmov 0.0   ;;  %vm1537_vm2 = vmmov 0   ;;  %s1913_s1 = inlined_call_operand.vmem [shape: f32[4,128], index: 1, kind: input, shape index: {}]   ;;  %s1914_s0 = inlined_call_operand.vmem [shape: f32[64,4], index: 0, kind: input, shape index: {}]   ;;  %s1915_s3 = inlined_call_operand.vmem [shape: f32[1,128], index: 3, kind: input, shape index: {}]   ;;  %s1916_s2 = inlined_call_operand.vmem [shape: f32[32,128], index: 2, kind: input, shape index: {}]   ;;  %s1917_s4 = inlined_call_operand.vmem [shape: f32[32,128], index: 4, kind: input, shape index: {}]   ;;  %s1918_s5 = inlined_call_operand.vmem [shape: f32[1,128], index: 5, kind: input, shape index: {}]   ;;  %s1919_s6 = inlined_call_operand.vmem [shape: f32[64,128], index: 6, kind: output, shape index: {}]  }
   0x1   :  { %v31_v0 = vld [vmem:[%s1913_s1] sm:$0xf]  ;;  %v24_v2 = vld [vmem:[%s1914_s0 + $0x8] sm:$0xff]  ;;  %s1534_s1 = smov 64   ;;  %v25_v18 = vld [vmem:[%s1914_s0 + $0x10] sm:$0xff]  ;;  %1364 = vmatprep.subr.mxu1 %v1536_v20  ;;  %1372 = vmatprep.mubr.msk.f32.mxu1 %vm1537_vm2, %v1536_v20  ;;  %vm206_vm3 = vcmask 261120  }
   0x2   :  { %v23_v1 = vld [vmem:[%s1914_s0] sm:$0xff]  ;;  %1339 = vmatprep.subr.msk.mxu0 %vm64_vm0, %v31_v0  ;;  %v26_v19 = vld [vmem:[%s1914_s0 + $0x18] sm:$0xff]  ;;  %v1613_v22 = vld [vmem:[%s1916_s2 + $0x10] sm:$0xff] }
   0x3   :  { %1341 = vmatprep.mubr.msk.f32.mxu0 %vm39_vm1, %v23_v1  ;;  %1340 = vmatpush3.msk.msra.mxu0 %vm64_vm0, %v31_v0  ;;  %v1589_v4 = vld [vmem:[%s1915_s3] ss:$0 sm:$0xff]  ;;  %v1607_v21 = vld [vmem:[%s1916_s2 + $0x18] sm:$0xff]  ;;  %v1625_v24 = vld [vmem:[%s1916_s2 + $0x8] sm:$0xff] }
   0x4   :  { %1342 = vmatmul.mubr.msk.f32.vlgmr.msra.gmra.mxu0 %vm39_vm1, %v24_v2  ;;  %1353 = vmatprep.subr.mxu0 %v1536_v20  ;;  %v27_v23 = vld [vmem:[%s1914_s0 + $0x20] sm:$0xff]  ;;  %v28_v25 = vld [vmem:[%s1914_s0 + $0x28] sm:$0xff]  ;;  %v29_v26 = vld [vmem:[%s1914_s0 + $0x30] sm:$0xff] }
   0x5   :  { %1344 = vmatprep.mubr.msk.f32.mxu0 %vm39_vm1, %v25_v18  ;;  %1354 = vmatpush3.msra.mxu0 %v1607_v21  ;;  %v1639_v27 = vld [vmem:[%s1916_s2] sm:$0xff]  ;;  %v30_v28 = vld [vmem:[%s1914_s0 + $0x38] sm:$0xff] }
   0x6   :  { %1355 = vmatprep.subr.mxu0 %v1536_v20  ;;  %1365 = vmatpush3.msra.mxu1 %v1607_v21 }
   0x7   :  { %1356 = vmatpush3.msra.mxu0 %v1613_v22  ;;  %1366 = vmatprep.subr.mxu1 %v1536_v20 }
   0x8   :  { %1345 = vmatmul.mubr.msk.f32.gmra.mxu0 %vm39_vm1, %v26_v19  ;;  %1357 = vmatprep.subr.mxu0 %v1536_v20 }
   0x9   :  { %1347 = vmatprep.mubr.msk.f32.mxu0 %vm39_vm1, %v27_v23  ;;  %1358 = vmatpush3.msra.mxu0 %v1625_v24 }
   0xa   :  { %1359 = vmatprep.subr.mxu0 %v1536_v20  ;;  %1367 = vmatpush3.msra.mxu1 %v1613_v22 }
   0xb   :  { %1360 = vmatpush3.msra.mxu0 %v1639_v27  ;;  %1368 = vmatprep.subr.mxu1 %v1536_v20 }
   0xc   :  { %1348 = vmatmul.mubr.msk.f32.gmra.mxu0 %vm39_vm1, %v28_v25  ;;  %1375 = vmatprep.subr.mxu0 %v1536_v20 }
   0xd   :  { %1350 = vmatprep.mubr.msk.f32.mxu0 %vm39_vm1, %v29_v26  ;;  %1369 = vmatpush3.msra.mxu1 %v1625_v24 }
   0xe   :  { %1370 = vmatprep.subr.mxu1 %v1536_v20 }
   0xf   :  { %1371 = vmatpush3.msra.mxu1 %v1639_v27 }
  0x10   :  { %1351 = vmatmul.mubr.msk.f32.gmra.mxu0 %vm39_vm1, %v30_v28  ;;  %1386 = vmatprep.subr.mxu1 %v1536_v20 }
  0x11   :  { %1361 = vmatprep.mubr.msk.f32.mxu0 %vm1537_vm2, %v1536_v20 }
  0xc4   :  { %v1584_v3 = vpop.f32.mrf.mxu0 }
  0xc5   :  { %v140_v39 = vadd.f32 %v1584_v3, %v1589_v4 }
  0xc6   :  { %v134_v5 = vpop.f32.mrf.mxu0 }
  0xc7   :  { %v135_v6 = vadd.f32 %v1589_v4, %v134_v5 }
  0xc8   :  { %v1677_v33 = vpop.f32.mrf.mxu0 }
  0xc9   :  { %v1251_v7 = vmul.f32 -1.442695, %v135_v6 }
  0xca   :  { %v144_v34 = vpop.f32.mrf.mxu0 }
  0xcb   :  { %1454 = vpow2.f32 %v1251_v7  ;;  %v145_v58 = vadd.f32 %v1589_v4, %v144_v34 }
  0xcc   :  { %v1679_v35 = vpop.f32.mrf.mxu0 }
  0xce   :  { %v1681_v36 = vpop.f32.mrf.mxu0 }
  0xd0   :  { %v1683_v37 = vpop.f32.mrf.mxu0 }
  0xd2   :  { %v1685_v38 = vpop.f32.mrf.mxu0 }
  0xd8   :  { %v1455_v8 = vpop.eup %1454 }
  0xd9   :  { %v180_v9 = vadd.f32 1.0, %v1455_v8 }
  0xdb   :  { %1456 = vrcp.f32 %v180_v9 }
  0xe8   :  { %v1457_v10 = vpop.eup %1456 }
  0xe9   :  { %v183_v11 = vmul.f32 2.0, %v1457_v10  ;;  %v185_v15 = vmul.f32 0.0, %v1457_v10 }
  0xeb   :  { %v1252_v12 = vadd.f32 -1.0, %v183_v11 }
  0xed   :  { %187 = vrot.lane.b32.xlu0 %v1252_v12, %s1534_s1 }
 0x15f   :  { %v188_v13 = vpop.permute.xlu0 %187 }
 0x160   :  { %v190_v14 = vmul.f32 %v1457_v10, %v188_v13 }
 0x162   :  { %192 = vrot.lane.b32.xlu0 %v190_v14, %s1535_s29  ;;  %v150_v14 = vadd.f32 %v1677_v33, %v1589_v4 }
 0x1d4   :  { %v193_v16 = vpop.permute.xlu0 %192 }
 0x1d5   :  { %v1594_v17 = vadd.f32 %v193_v16, %v185_v15 }
 0x1d7   :  { %1458 = vtanh.f32 %v1594_v17 }
 0x1e4   :  { %v1459_v29 = vpop.eup %1458 }
 0x1e5   :  { %198 = vrot.lane.b32.xlu1 %v1459_v29, %s1534_s1 }
 0x257   :  { %v199_v30 = vpop.permute.xlu1 %198 }
 0x258   :  { %v201_v31 = vmul.f32 %v1457_v10, %v199_v30 }
 0x25a   :  { %203 = vrot.lane.b32.xlu1 %v201_v31, %s1535_s29 }
 0x2cc   :  { %v204_v32 = vpop.permute.xlu1 %203 }
 0x2cd   :  { %207 = vst.msk [vmem:[#allocation2] sm:$0xff] %vm206_vm3, %v204_v32  ;;  %1362 = vmatmul.mubr.msk.f32.vlgmr.msra.gmra.mxu0 %vm206_vm3, %v204_v32 }
 0x2ce   :  { %1376 = vmatpush3.msra.mxu0 %v1607_v21  ;;  %1383 = vmatprep.mubr.msk.f32.mxu0 %vm1537_vm2, %v1536_v20 }
 0x2cf   :  { %1377 = vmatprep.subr.mxu0 %v1536_v20 }
 0x2d0   :  { %1378 = vmatpush3.msra.mxu0 %v1613_v22 }
 0x2d1   :  { %1379 = vmatprep.subr.mxu0 %v1536_v20 }
 0x2d2   :  { %1380 = vmatpush3.msra.mxu0 %v1625_v24 }
 0x2d3   :  { %1381 = vmatprep.subr.mxu0 %v1536_v20 }
 0x2d4   :  { %1382 = vmatpush3.msra.mxu0 %v1639_v27 }
 0x2d5   :  { %1397 = vmatprep.subr.mxu0 %v1536_v20 }
 0x38d   :  { %v276_v40 = vpop.f32.mrf.mxu0 }
 0x38e   :  { %v280_v41 = vadd.f32 %v276_v40, %v140_v39 }
 0x38f   :  { %v1363_v42 = vpop.f32.mrf.mxu0 }
 0x390   :  { %v1254_v43 = vmul.f32 -1.442695, %v280_v41  ;;  %v155_v42 = vadd.f32 %v1589_v4, %v1681_v36 }
 0x392   :  { %1460 = vpow2.f32 %v1254_v43 }
 0x39f   :  { %v1461_v44 = vpop.eup %1460 }
 0x3a0   :  { %v284_v45 = vadd.f32 1.0, %v1461_v44 }
 0x3a2   :  { %1462 = vrcp.f32 %v284_v45 }
 0x3af   :  { %v1463_v46 = vpop.eup %1462 }
 0x3b0   :  { %v287_v47 = vmul.f32 2.0, %v1463_v46  ;;  %v289_v51 = vmul.f32 %v1463_v46, %v1594_v17 }
 0x3b2   :  { %v1255_v48 = vadd.f32 -1.0, %v287_v47 }
 0x3b4   :  { %291 = vrot.lane.b32.xlu0 %v1255_v48, %s1534_s1 }
 0x426   :  { %v292_v49 = vpop.permute.xlu0 %291 }
 0x427   :  { %v294_v50 = vmul.f32 %v1463_v46, %v292_v49 }
 0x429   :  { %296 = vrot.lane.b32.xlu1 %v294_v50, %s1535_s29 }
 0x49b   :  { %v297_v52 = vpop.permute.xlu1 %296 }
 0x49c   :  { %v299_v53 = vadd.f32 %v297_v52, %v289_v51 }
 0x49e   :  { %1464 = vtanh.f32 %v299_v53 }
 0x4ab   :  { %v1465_v54 = vpop.eup %1464 }
 0x4ac   :  { %302 = vrot.lane.b32.xlu0 %v1465_v54, %s1534_s1 }
 0x51e   :  { %v303_v55 = vpop.permute.xlu0 %302 }
 0x51f   :  { %v305_v56 = vmul.f32 %v1463_v46, %v303_v55 }
 0x521   :  { %307 = vrot.lane.b32.xlu1 %v305_v56, %s1535_s29 }
 0x593   :  { %v308_v57 = vpop.permute.xlu1 %307 }
 0x594   :  { %310 = vst.msk [vmem:[#allocation2 + $0x8] sm:$0xff] %vm206_vm3, %v308_v57  ;;  %1373 = vmatmul.mubr.msk.f32.vlgmr.msra.gmra.mxu1 %vm206_vm3, %v308_v57 }
 0x595   :  { %1387 = vmatpush3.msra.mxu1 %v1607_v21  ;;  %1394 = vmatprep.mubr.msk.f32.mxu1 %vm1537_vm2, %v1536_v20 }
 0x596   :  { %1388 = vmatprep.subr.mxu1 %v1536_v20 }
 0x597   :  { %1389 = vmatpush3.msra.mxu1 %v1613_v22 }
 0x598   :  { %1390 = vmatprep.subr.mxu1 %v1536_v20 }
 0x599   :  { %1391 = vmatpush3.msra.mxu1 %v1625_v24 }
 0x59a   :  { %1392 = vmatprep.subr.mxu1 %v1536_v20 }
 0x59b   :  { %1393 = vmatpush3.msra.mxu1 %v1639_v27 }
 0x59c   :  { %1408 = vmatprep.subr.mxu1 %v1536_v20 }
 0x654   :  { %v379_v59 = vpop.f32.mrf.mxu1 }
 0x655   :  { %v383_v60 = vadd.f32 %v379_v59, %v145_v58 }
 0x656   :  { %v1374_v61 = vpop.f32.mrf.mxu1 }
 0x657   :  { %v1257_v62 = vmul.f32 -1.442695, %v383_v60  ;;  %v160_v60 = vadd.f32 %v1679_v35, %v1589_v4 }
 0x659   :  { %1466 = vpow2.f32 %v1257_v62 }
 0x666   :  { %v1467_v63 = vpop.eup %1466 }
 0x667   :  { %v387_v0 = vadd.f32 1.0, %v1467_v63 }
 0x669   :  { %1468 = vrcp.f32 %v387_v0 }
 0x676   :  { %v1469_v1 = vpop.eup %1468 }
 0x677   :  { %v390_v2 = vmul.f32 2.0, %v1469_v1  ;;  %v392_v7 = vmul.f32 %v1469_v1, %v299_v53 }
 0x679   :  { %v1258_v3 = vadd.f32 -1.0, %v390_v2 }
 0x67b   :  { %394 = vrot.lane.b32.xlu0 %v1258_v3, %s1534_s1 }
 0x6ed   :  { %v395_v5 = vpop.permute.xlu0 %394 }
 0x6ee   :  { %v397_v6 = vmul.f32 %v1469_v1, %v395_v5 }
 0x6f0   :  { %399 = vrot.lane.b32.xlu1 %v397_v6, %s1535_s29  ;;  %v940_v6 = vld [vmem:[%s1917_s4 + $0x18] sm:$0xff] }
 0x762   :  { %v400_v8 = vpop.permute.xlu1 %399 }
 0x763   :  { %v402_v9 = vadd.f32 %v400_v8, %v392_v7 }
 0x765   :  { %1470 = vtanh.f32 %v402_v9 }
 0x772   :  { %v1471_v10 = vpop.eup %1470 }
 0x773   :  { %405 = vrot.lane.b32.xlu0 %v1471_v10, %s1534_s1 }
 0x7e5   :  { %v406_v11 = vpop.permute.xlu0 %405 }
 0x7e6   :  { %v408_v12 = vmul.f32 %v1469_v1, %v406_v11  ;;  %v939_v11 = vld [vmem:[%s1917_s4 + $0x10] sm:$0xff] }
 0x7e8   :  { %410 = vrot.lane.b32.xlu1 %v408_v12, %s1535_s29  ;;  %v929_v12 = vld [vmem:[#allocation2] sm:$0xff] }
 0x85a   :  { %v411_v13 = vpop.permute.xlu1 %410 }
 0x85b   :  { %413 = vst.msk [vmem:[#allocation2 + $0x10] sm:$0xff] %vm206_vm3, %v411_v13  ;;  %1384 = vmatmul.mubr.msk.f32.vlgmr.msra.gmra.mxu0 %vm206_vm3, %v411_v13  ;;  %v938_v13 = vld [vmem:[%s1917_s4 + $0x8] sm:$0xff] }
 0x85c   :  { %1398 = vmatpush3.msra.mxu0 %v1607_v21  ;;  %1405 = vmatprep.mubr.msk.f32.mxu0 %vm1537_vm2, %v1536_v20 }
 0x85d   :  { %1399 = vmatprep.subr.mxu0 %v1536_v20 }
 0x85e   :  { %1400 = vmatpush3.msra.mxu0 %v1613_v22 }
 0x85f   :  { %1401 = vmatprep.subr.mxu0 %v1536_v20 }
 0x860   :  { %1402 = vmatpush3.msra.mxu0 %v1625_v24 }
 0x861   :  { %1403 = vmatprep.subr.mxu0 %v1536_v20 }
 0x862   :  { %1404 = vmatpush3.msra.mxu0 %v1639_v27 }
 0x863   :  { %1419 = vmatprep.subr.mxu0 %v1536_v20 }
 0x91b   :  { %v482_v15 = vpop.f32.mrf.mxu0 }
 0x91c   :  { %v486_v16 = vadd.f32 %v482_v15, %v150_v14  ;;  %v937_v14 = vld [vmem:[%s1917_s4] sm:$0xff]  ;;  %v930_v15 = vld [vmem:[#allocation2 + $0x8] sm:$0xff] }
 0x91d   :  { %v1385_v17 = vpop.f32.mrf.mxu0 }
 0x91e   :  { %v1260_v18 = vmul.f32 -1.442695, %v486_v16  ;;  %v931_v16 = vld [vmem:[#allocation2 + $0x10] sm:$0xff] }
 0x920   :  { %1472 = vpow2.f32 %v1260_v18 }
 0x92d   :  { %v1473_v19 = vpop.eup %1472 }
 0x92e   :  { %v490_v23 = vadd.f32 1.0, %v1473_v19 }
 0x930   :  { %1474 = vrcp.f32 %v490_v23  ;;  %v165_v23 = vadd.f32 %v1589_v4, %v1685_v38 }
 0x93d   :  { %v1475_v25 = vpop.eup %1474 }
 0x93e   :  { %v493_v26 = vmul.f32 2.0, %v1475_v25  ;;  %v495_v31 = vmul.f32 %v1475_v25, %v402_v9 }
 0x940   :  { %v1261_v28 = vadd.f32 -1.0, %v493_v26 }
 0x942   :  { %497 = vrot.lane.b32.xlu0 %v1261_v28, %s1534_s1 }
 0x9b4   :  { %v498_v29 = vpop.permute.xlu0 %497 }
 0x9b5   :  { %v500_v30 = vmul.f32 %v1475_v25, %v498_v29 }
 0x9b7   :  { %502 = vrot.lane.b32.xlu1 %v500_v30, %s1535_s29  ;;  %v1791_v30 = vld [vmem:[%s1918_s5] ss:$0 sm:$0xff] }
 0xa29   :  { %v503_v32 = vpop.permute.xlu1 %502 }
 0xa2a   :  { %v505_v33 = vadd.f32 %v503_v32, %v495_v31 }
 0xa2c   :  { %1476 = vtanh.f32 %v505_v33 }
 0xa39   :  { %v1477_v34 = vpop.eup %1476 }
 0xa3a   :  { %508 = vrot.lane.b32.xlu0 %v1477_v34, %s1534_s1 }
 0xaac   :  { %v509_v39 = vpop.permute.xlu0 %508 }
 0xaad   :  { %v511_v40 = vmul.f32 %v1475_v25, %v509_v39 }
 0xaaf   :  { %513 = vrot.lane.b32.xlu1 %v511_v40, %s1535_s29 }
 0xb21   :  { %v514_v41 = vpop.permute.xlu1 %513 }
 0xb22   :  { %516 = vst.msk [vmem:[#allocation2 + $0x18] sm:$0xff] %vm206_vm3, %v514_v41  ;;  %1395 = vmatmul.mubr.msk.f32.vlgmr.msra.gmra.mxu1 %vm206_vm3, %v514_v41 }
 0xb23   :  { %1409 = vmatpush3.msra.mxu1 %v1607_v21  ;;  %1416 = vmatprep.mubr.msk.f32.mxu1 %vm1537_vm2, %v1536_v20 }
 0xb24   :  { %1410 = vmatprep.subr.mxu1 %v1536_v20 }
 0xb25   :  { %1411 = vmatpush3.msra.mxu1 %v1613_v22 }
 0xb26   :  { %1412 = vmatprep.subr.mxu1 %v1536_v20 }
 0xb27   :  { %1413 = vmatpush3.msra.mxu1 %v1625_v24 }
 0xb28   :  { %1414 = vmatprep.subr.mxu1 %v1536_v20 }
 0xb29   :  { %1415 = vmatpush3.msra.mxu1 %v1639_v27  ;;  %v932_v17 = vld [vmem:[#allocation2 + $0x18] sm:$0xff] }
 0xb2a   :  { %1430 = vmatprep.subr.mxu1 %v940_v6 }
 0xbe2   :  { %v585_v43 = vpop.f32.mrf.mxu1 }
 0xbe3   :  { %v589_v44 = vadd.f32 %v585_v43, %v155_v42 }
 0xbe4   :  { %v1396_v45 = vpop.f32.mrf.mxu1 }
 0xbe5   :  { %v1263_v46 = vmul.f32 -1.442695, %v589_v44 }
 0xbe7   :  { %1478 = vpow2.f32 %v1263_v46 }
 0xbf4   :  { %v1479_v47 = vpop.eup %1478 }
 0xbf5   :  { %v593_v48 = vadd.f32 1.0, %v1479_v47 }
 0xbf7   :  { %1480 = vrcp.f32 %v593_v48 }
 0xc04   :  { %v1481_v49 = vpop.eup %1480 }
 0xc05   :  { %v596_v50 = vmul.f32 2.0, %v1481_v49  ;;  %v598_v54 = vmul.f32 %v1481_v49, %v505_v33 }
 0xc07   :  { %v1264_v51 = vadd.f32 -1.0, %v596_v50 }
 0xc09   :  { %600 = vrot.lane.b32.xlu0 %v1264_v51, %s1534_s1 }
 0xc7b   :  { %v601_v52 = vpop.permute.xlu0 %600 }
 0xc7c   :  { %v603_v53 = vmul.f32 %v1481_v49, %v601_v52 }
 0xc7e   :  { %605 = vrot.lane.b32.xlu1 %v603_v53, %s1535_s29 }
 0xcf0   :  { %v606_v55 = vpop.permute.xlu1 %605 }
 0xcf1   :  { %v608_v36 = vadd.f32 %v606_v55, %v598_v54 }
 0xcf3   :  { %1482 = vtanh.f32 %v608_v36 }
 0xd00   :  { %v1483_v56 = vpop.eup %1482 }
 0xd01   :  { %611 = vrot.lane.b32.xlu0 %v1483_v56, %s1534_s1 }
 0xd73   :  { %v612_v57 = vpop.permute.xlu0 %611 }
 0xd74   :  { %v614_v58 = vmul.f32 %v1481_v49, %v612_v57 }
 0xd76   :  { %616 = vrot.lane.b32.xlu1 %v614_v58, %s1535_s29 }
 0xde8   :  { %v617_v59 = vpop.permute.xlu1 %616 }
 0xde9   :  { %619 = vst.msk [vmem:[#allocation2 + $0x20] sm:$0xff] %vm206_vm3, %v617_v59  ;;  %1406 = vmatmul.mubr.msk.f32.vlgmr.msra.gmra.mxu0 %vm206_vm3, %v617_v59 }
 0xdea   :  { %1420 = vmatpush3.msra.mxu0 %v1607_v21  ;;  %1427 = vmatprep.mubr.msk.f32.mxu0 %vm1537_vm2, %v1536_v20 }
 0xdeb   :  { %1421 = vmatprep.subr.mxu0 %v1536_v20 }
 0xdec   :  { %1422 = vmatpush3.msra.mxu0 %v1613_v22 }
 0xded   :  { %1423 = vmatprep.subr.mxu0 %v1536_v20 }
 0xdee   :  { %1424 = vmatpush3.msra.mxu0 %v1625_v24 }
 0xdef   :  { %1425 = vmatprep.subr.mxu0 %v1536_v20 }
 0xdf0   :  { %1426 = vmatpush3.msra.mxu0 %v1639_v27  ;;  %v933_v18 = vld [vmem:[#allocation2 + $0x20] sm:$0xff] }
 0xea9   :  { %v688_v61 = vpop.f32.mrf.mxu0 }
 0xeaa   :  { %v692_v21 = vadd.f32 %v688_v61, %v160_v60 }
 0xeab   :  { %v1407_v62 = vpop.f32.mrf.mxu0 }
 0xeac   :  { %v1266_v63 = vmul.f32 -1.442695, %v692_v21 }
 0xeae   :  { %1484 = vpow2.f32 %v1266_v63 }
 0xebb   :  { %v1485_v0 = vpop.eup %1484 }
 0xebc   :  { %v696_v1 = vadd.f32 1.0, %v1485_v0 }
 0xebe   :  { %1486 = vrcp.f32 %v696_v1 }
 0xecb   :  { %v1487_v22 = vpop.eup %1486 }
 0xecc   :  { %v699_v2 = vmul.f32 2.0, %v1487_v22  ;;  %v701_v27 = vmul.f32 %v1487_v22, %v608_v36 }
 0xece   :  { %v1267_v3 = vadd.f32 -1.0, %v699_v2 }
 0xed0   :  { %703 = vrot.lane.b32.xlu0 %v1267_v3, %s1534_s1 }
 0xf42   :  { %v704_v24 = vpop.permute.xlu0 %703 }
 0xf43   :  { %v706_v20 = vmul.f32 %v1487_v22, %v704_v24 }
 0xf45   :  { %708 = vrot.lane.b32.xlu1 %v706_v20, %s1535_s29 }
 0xfb7   :  { %v709_v5 = vpop.permute.xlu1 %708 }
 0xfb8   :  { %v1761_v35 = vadd.f32 %v709_v5, %v701_v27 }
 0xfba   :  { %1488 = vtanh.f32 %v1761_v35 }
 0xfc7   :  { %v1489_v7 = vpop.eup %1488 }
 0xfc8   :  { %714 = vrot.lane.b32.xlu0 %v1489_v7, %s1534_s1 }
0x103a   :  { %v715_v8 = vpop.permute.xlu0 %714 }
0x103b   :  { %v717_v9 = vmul.f32 %v1487_v22, %v715_v8 }
0x103d   :  { %719 = vrot.lane.b32.xlu1 %v717_v9, %s1535_s29 }
0x10af   :  { %v720_v10 = vpop.permute.xlu1 %719 }
0x10b0   :  { %722 = vst.msk [vmem:[#allocation2 + $0x28] sm:$0xff] %vm206_vm3, %v720_v10  ;;  %1417 = vmatmul.mubr.msk.f32.vlgmr.msra.gmra.mxu1 %vm206_vm3, %v720_v10 }
0x10b1   :  { %1431 = vmatpush3.msra.mxu1 %v940_v6  ;;  %1438 = vmatprep.mubr.msk.f32.mxu1 %vm206_vm3, %v929_v12 }
0x10b2   :  { %1432 = vmatprep.subr.mxu1 %v939_v11 }
0x10b3   :  { %1433 = vmatpush3.msra.mxu1 %v939_v11 }
0x10b4   :  { %1434 = vmatprep.subr.mxu1 %v938_v13 }
0x10b5   :  { %1435 = vmatpush3.msra.mxu1 %v938_v13 }
0x10b6   :  { %1436 = vmatprep.subr.mxu1 %v937_v14 }
0x10b7   :  { %1437 = vmatpush3.msra.mxu1 %v937_v14  ;;  %v934_v19 = vld [vmem:[#allocation2 + $0x28] sm:$0xff] }
0x10b8   :  { %1439 = vmatmul.mubr.msk.f32.vlgmr.msra.gmra.mxu1 %vm206_vm3, %v930_v15 }
0x10b9   :  { %1441 = vmatprep.mubr.msk.f32.mxu1 %vm206_vm3, %v931_v16 }
0x10bc   :  { %1442 = vmatmul.mubr.msk.f32.gmra.mxu1 %vm206_vm3, %v932_v17 }
0x10bd   :  { %1444 = vmatprep.mubr.msk.f32.mxu1 %vm206_vm3, %v933_v18 }
0x10c0   :  { %1445 = vmatmul.mubr.msk.f32.gmra.mxu1 %vm206_vm3, %v934_v19 }
0x1170   :  { %v791_v25 = vpop.f32.mrf.mxu1 }
0x1171   :  { %v795_v26 = vadd.f32 %v791_v25, %v165_v23 }
0x1172   :  { %v1418_v28 = vpop.f32.mrf.mxu1 }
0x1173   :  { %v1269_v29 = vmul.f32 -1.442695, %v795_v26 }
0x1175   :  { %1490 = vpow2.f32 %v1269_v29 }
0x1178   :  { %v1440_v31 = vpop.f32.mrf.mxu1 }
0x1179   :  { %v1794_v32 = vadd.f32 %v1440_v31, %v1791_v30 }
0x117a   :  { %v1038_v33 = vpop.f32.mrf.mxu1 }
0x117b   :  { %v1102_v34 = vand.u32 2147483647, %v1794_v32  ;;  %v1798_v39 = vadd.f32 %v1791_v30, %v1038_v33  ;;  %v1078_v23 = vmax.f32 %v1794_v32, 0.0  ;;  %vm1086_vm4 = vcmp.ne.f32.partialorder %v1794_v32, %v1794_v32 }
0x117c   :  { %v1443_v38 = vpop.f32.mrf.mxu1 }
0x117d   :  { %v1110_v40 = vsub.f32 0.0, %v1102_v34  ;;  %v1101_v41 = vand.u32 2147483647, %v1798_v39  ;;  %v1802_v42 = vadd.f32 %v1443_v38, %v1791_v30  ;;  %v1077_v29 = vmax.f32 %v1798_v39, 0.0 }
0x117e   :  { %v1048_v43 = vpop.f32.mrf.mxu1  ;;  %vm1085_vm6 = vcmp.ne.f32.partialorder %v1798_v39, %v1798_v39 }
0x117f   :  { %v1119_v44 = vmul.f32 1.442695, %v1110_v40  ;;  %v1109_v45 = vsub.f32 0.0, %v1101_v41  ;;  %v1805_v46 = vadd.f32 %v1791_v30, %v1048_v43  ;;  %v1104_v47 = vand.u32 2147483647, %v1802_v42 }
0x1180   :  { %v1446_v48 = vpop.f32.mrf.mxu1  ;;  %vm1088_vm10 = vcmp.ne.f32.partialorder %v1802_v42, %v1802_v42 }
0x1181   :  { %1492 = vpow2.f32 %v1119_v44  ;;  %v1117_v49 = vmul.f32 1.442695, %v1109_v45  ;;  %v1112_v51 = vsub.f32 0.0, %v1104_v47  ;;  %v1103_v52 = vand.u32 2147483647, %v1805_v46 }
0x1182   :  { %v1491_v50 = vpop.eup %1490  ;;  %v1810_v53 = vadd.f32 %v1446_v48, %v1791_v30  ;;  %v1058_v54 = vpop.f32.mrf.mxu1  ;;  %v1080_v47 = vmax.f32 %v1802_v42, 0.0  ;;  %vm1087_vm11 = vcmp.ne.f32.partialorder %v1805_v46, %v1805_v46 }
0x1183   :  { %v799_v55 = vadd.f32 1.0, %v1491_v50  ;;  %1494 = vpow2.f32 %v1117_v49  ;;  %v1813_v36 = vadd.f32 %v1791_v30, %v1058_v54  ;;  %v1123_v56 = vmul.f32 1.442695, %v1112_v51 }
0x1184   :  { %v1111_v57 = vsub.f32 0.0, %v1103_v52  ;;  %v1106_v58 = vand.u32 2147483647, %v1810_v53  ;;  %v1079_v52 = vmax.f32 %v1805_v46, 0.0  ;;  %vm1090_vm14 = vcmp.ne.f32.partialorder %v1810_v53, %v1810_v53 }
0x1185   :  { %1496 = vrcp.f32 %v799_v55  ;;  %v1105_v60 = vand.u32 2147483647, %v1813_v36  ;;  %vm1089_vm15 = vcmp.ne.f32.partialorder %v1813_v36, %v1813_v36 }
0x1186   :  { %1498 = vpow2.f32 %v1123_v56  ;;  %v1121_v59 = vmul.f32 1.442695, %v1111_v57  ;;  %v1114_v61 = vsub.f32 0.0, %v1106_v58 }
0x1187   :  { %v1113_v21 = vsub.f32 0.0, %v1105_v60 }
0x1188   :  { %1500 = vpow2.f32 %v1121_v59  ;;  %v1127_v62 = vmul.f32 1.442695, %v1114_v61 }
0x1189   :  { %v1125_v63 = vmul.f32 1.442695, %v1113_v21 }
0x118a   :  { %1502 = vpow2.f32 %v1127_v62 }
0x118b   :  { %1504 = vpow2.f32 %v1125_v63 }
0x118e   :  { %v1493_v0 = vpop.eup %1492 }
0x118f   :  { %v1142_v1 = vadd.f32 1.0, %v1493_v0  ;;  %v1145_v8 = vmul.f32 -0.5, %v1493_v0  ;;  %v1148_v15 = vand.u32 2147483647, %v1493_v0 }
0x1190   :  { %v1495_v22 = vpop.eup %1494 }
0x1191   :  { %1506 = vlog2.f32 %v1142_v1  ;;  %v1133_v2 = vadd.f32 1.0, %v1495_v22  ;;  %v1136_v10 = vmul.f32 -0.5, %v1495_v22  ;;  %v1146_v14 = vadd.f32 1.0, %v1145_v8 }
0x1192   :  { %v1817_v3 = vpop.eup %1496  ;;  %v1139_v25 = vand.u32 2147483647, %v1495_v22  ;;  %vm1149_vm5 = vcmp.lt.f32.partialorder %v1148_v15, 0.0004427343 }
0x1193   :  { %v1499_v24 = vpop.eup %1498  ;;  %1508 = vlog2.f32 %v1133_v2  ;;  %v802_v20 = vmul.f32 2.0, %v1817_v3  ;;  %v1137_v16 = vadd.f32 1.0, %v1136_v10  ;;  %v1147_v28 = vmul.f32 %v1493_v0, %v1146_v14 }
0x1194   :  { %v1160_v27 = vadd.f32 1.0, %v1499_v24  ;;  %v1163_v17 = vmul.f32 -0.5, %v1499_v24  ;;  %v1166_v31 = vand.u32 2147483647, %v1499_v24  ;;  %vm1140_vm7 = vcmp.lt.f32.partialorder %v1139_v25, 0.0004427343 }
0x1195   :  { %v1501_v5 = vpop.eup %1500  ;;  %v1270_v6 = vadd.f32 -1.0, %v802_v20  ;;  %v1138_v34 = vmul.f32 %v1495_v22, %v1137_v16 }
0x1196   :  { %1510 = vlog2.f32 %v1160_v27  ;;  %v1151_v7 = vadd.f32 1.0, %v1501_v5  ;;  %v1154_v18 = vmul.f32 -0.5, %v1501_v5  ;;  %v1164_v38 = vadd.f32 1.0, %v1163_v17 }
0x1197   :  { %806 = vrot.lane.b32.xlu0 %v1270_v6, %s1534_s1  ;;  %v1821_v9 = vpop.eup %1502  ;;  %vm1836_vm8 = vcmp.lt.f32.partialorder %v1166_v31, 0.0004427343  ;;  %v1157_v54 = vand.u32 2147483647, %v1501_v5  ;;  %v1082_v27 = vmax.f32 %v1810_v53, 0.0  ;;  %v1081_v17 = vmax.f32 %v1813_v36, 0.0 }
0x1198   :  { %1512 = vlog2.f32 %v1151_v7  ;;  %v1823_v11 = vpop.eup %1504  ;;  %v1178_v12 = vadd.f32 1.0, %v1821_v9  ;;  %v1155_v43 = vadd.f32 1.0, %v1154_v18  ;;  %v1181_v44 = vmul.f32 -0.5, %v1821_v9 }
0x1199   :  { %v1169_v13 = vadd.f32 1.0, %v1823_v11  ;;  %v1172_v48 = vmul.f32 -0.5, %v1823_v11  ;;  %v1165_v58 = vmul.f32 %v1499_v24, %v1164_v38  ;;  %v1184_v62 = vand.u32 2147483647, %v1821_v9 }
0x119a   :  { %1514 = vlog2.f32 %v1178_v12  ;;  %v1156_v61 = vmul.f32 %v1501_v5, %v1155_v43  ;;  %v1182_v21 = vadd.f32 1.0, %v1181_v44  ;;  %vm1158_vm9 = vcmp.lt.f32.partialorder %v1157_v54, 0.0004427343 }
0x119b   :  { %1516 = vlog2.f32 %v1169_v13  ;;  %v1173_v22 = vadd.f32 1.0, %v1172_v48  ;;  %v1175_v24 = vand.u32 2147483647, %v1823_v11  ;;  %vm1185_vm12 = vcmp.lt.f32.partialorder %v1184_v62, 0.0004427343 }
0x119c   :  { %v1183_v10 = vmul.f32 %v1821_v9, %v1182_v21 }
0x119d   :  { %v1174_v14 = vmul.f32 %v1823_v11, %v1173_v22  ;;  %vm1176_vm13 = vcmp.lt.f32.partialorder %v1175_v24, 0.0004427343 }
0x119e   :  { %v1507_v19 = vpop.eup %1506 }
0x119f   :  { %v1144_v26 = vmul.f32 0.6931472, %v1507_v19 }
0x11a0   :  { %v1509_v33 = vpop.eup %1508 }
0x11a1   :  { %v1150_v40 = vsel %vm1149_vm5, %v1147_v28, %v1144_v26  ;;  %v1135_v41 = vmul.f32 0.6931472, %v1509_v33 }
0x11a2   :  { %v1206_v45 = vadd.f32 %v1150_v40, %v1078_v23 }
0x11a3   :  { %v1511_v49 = vpop.eup %1510  ;;  %v1141_v50 = vsel %vm1140_vm7, %v1138_v34, %v1135_v41 }
0x11a4   :  { %v1214_v55 = vsel %vm1086_vm4, %v1794_v32, %v1206_v45  ;;  %v1205_v56 = vadd.f32 %v1141_v50, %v1077_v29  ;;  %v1162_v57 = vmul.f32 0.6931472, %v1511_v49 }
0x11a5   :  { %v1513_v59 = vpop.eup %1512  ;;  %v1222_v60 = vadd.f32 1e-06, %v1214_v55 }
0x11a6   :  { %v1213_v63 = vsel %vm1085_vm6, %v1798_v39, %v1205_v56  ;;  %v1168_v0 = vsel %vm1836_vm8, %v1165_v58, %v1162_v57  ;;  %v1153_v1 = vmul.f32 0.6931472, %v1513_v59 }
0x11a7   :  { %1230 = vst [vmem:[%s1919_s6 + $0x8] sm:$0xff] %v1222_v60  ;;  %v1221_v32 = vadd.f32 1e-06, %v1213_v63  ;;  %v1208_v2 = vadd.f32 %v1168_v0, %v1080_v47  ;;  %v1515_v20 = vpop.eup %1514 }
0x11a8   :  { %v1159_v39 = vsel %vm1158_vm9, %v1156_v61, %v1153_v1  ;;  %v1517_v5 = vpop.eup %1516  ;;  %v1180_v8 = vmul.f32 0.6931472, %v1515_v20 }
0x11a9   :  { %1229 = vst [vmem:[%s1919_s6] sm:$0xff] %v1221_v32  ;;  %v1216_v6 = vsel %vm1088_vm10, %v1802_v42, %v1208_v2  ;;  %v1207_v7 = vadd.f32 %v1159_v39, %v1079_v52  ;;  %v1171_v13 = vmul.f32 0.6931472, %v1517_v5 }
0x11aa   :  { %v1224_v12 = vadd.f32 1e-06, %v1216_v6  ;;  %v1186_v16 = vsel %vm1185_vm12, %v1183_v10, %v1180_v8 }
0x11ab   :  { %v1215_v15 = vsel %vm1087_vm11, %v1805_v46, %v1207_v7  ;;  %v1210_v18 = vadd.f32 %v1186_v16, %v1082_v27  ;;  %v1177_v19 = vsel %vm1176_vm13, %v1174_v14, %v1171_v13 }
0x11ac   :  { %1232 = vst [vmem:[%s1919_s6 + $0x18] sm:$0xff] %v1224_v12  ;;  %v1223_v42 = vadd.f32 1e-06, %v1215_v15  ;;  %v1209_v9 = vadd.f32 %v1177_v19, %v1081_v17 }
0x11ad   :  { %v1218_v46 = vsel %vm1090_vm14, %v1810_v53, %v1210_v18  ;;  %v804_v53 = vmul.f32 %v1817_v3, %v1761_v35  ;;  %v170_v35 = vadd.f32 %v1683_v37, %v1589_v4 }
0x11ae   :  { %1231 = vst [vmem:[%s1919_s6 + $0x10] sm:$0xff] %v1223_v42  ;;  %v1226_v11 = vadd.f32 1e-06, %v1218_v46  ;;  %v1217_v23 = vsel %vm1089_vm15, %v1813_v36, %v1209_v9 }
0x11af   :  { %v1225_v25 = vadd.f32 1e-06, %v1217_v23 }
0x11b0   :  { %1234 = vst [vmem:[%s1919_s6 + $0x28] sm:$0xff] %v1226_v11 }
0x11b1   :  { %1233 = vst [vmem:[%s1919_s6 + $0x20] sm:$0xff] %v1225_v25 }
0x1209   :  { %v807_v26 = vpop.permute.xlu0 %806 }
0x120a   :  { %v809_v28 = vmul.f32 %v1817_v3, %v807_v26 }
0x120c   :  { %811 = vrot.lane.b32.xlu1 %v809_v28, %s1535_s29 }
0x127e   :  { %v812_v29 = vpop.permute.xlu1 %811 }
0x127f   :  { %v814_v31 = vadd.f32 %v812_v29, %v804_v53 }
0x1281   :  { %1518 = vtanh.f32 %v814_v31 }
0x128e   :  { %v1519_v36 = vpop.eup %1518 }
0x128f   :  { %817 = vrot.lane.b32.xlu0 %v1519_v36, %s1534_s1 }
0x1301   :  { %v818_v33 = vpop.permute.xlu0 %817 }
0x1302   :  { %v820_v34 = vmul.f32 %v1817_v3, %v818_v33 }
0x1304   :  { %822 = vrot.lane.b32.xlu1 %v820_v34, %s1535_s29 }
0x1376   :  { %v823_v38 = vpop.permute.xlu1 %822 }
0x1377   :  { %825 = vst.msk [vmem:[#allocation2 + $0x30] sm:$0xff] %vm206_vm3, %v823_v38  ;;  %1428 = vmatmul.mubr.msk.f32.vlgmr.msra.gmra.mxu0 %vm206_vm3, %v823_v38 }
0x137e   :  { %v935_v40 = vld [vmem:[#allocation2 + $0x30] sm:$0xff] }
0x137f   :  { %1447 = vmatprep.mubr.msk.f32.mxu1 %vm206_vm3, %v935_v40 }
0x1437   :  { %v894_v41 = vpop.f32.mrf.mxu0 }
0x1438   :  { %v898_v43 = vadd.f32 %v894_v41, %v170_v35 }
0x1439   :  { %v1429_v44 = vpop.f32.mrf.mxu0 }
0x143a   :  { %v1272_v45 = vmul.f32 -1.442695, %v898_v43 }
0x143c   :  { %1520 = vpow2.f32 %v1272_v45 }
0x1449   :  { %v1521_v47 = vpop.eup %1520 }
0x144a   :  { %v902_v3 = vadd.f32 1.0, %v1521_v47 }
0x144c   :  { %1522 = vrcp.f32 %v902_v3 }
0x1459   :  { %v1523_v48 = vpop.eup %1522 }
0x145a   :  { %v905_v49 = vmul.f32 2.0, %v1523_v48  ;;  %v907_v54 = vmul.f32 %v1523_v48, %v814_v31 }
0x145c   :  { %v1273_v50 = vadd.f32 -1.0, %v905_v49 }
0x145e   :  { %909 = vrot.lane.b32.xlu0 %v1273_v50, %s1534_s1 }
0x14d0   :  { %v910_v51 = vpop.permute.xlu0 %909 }
0x14d1   :  { %v912_v52 = vmul.f32 %v1523_v48, %v910_v51 }
0x14d3   :  { %914 = vrot.lane.b32.xlu1 %v912_v52, %s1535_s29 }
0x1545   :  { %v915_v55 = vpop.permute.xlu1 %914 }
0x1546   :  { %v917_v4 = vadd.f32 %v915_v55, %v907_v54 }
0x1548   :  { %1524 = vtanh.f32 %v917_v4 }
0x1555   :  { %v1525_v37 = vpop.eup %1524 }
0x1556   :  { %920 = vrot.lane.b32.xlu0 %v1525_v37, %s1534_s1 }
0x15c8   :  { %v921_v56 = vpop.permute.xlu0 %920 }
0x15c9   :  { %v923_v57 = vmul.f32 %v1523_v48, %v921_v56 }
0x15cb   :  { %925 = vrot.lane.b32.xlu1 %v923_v57, %s1535_s29 }
0x163d   :  { %v926_v58 = vpop.permute.xlu1 %925 }
0x163e   :  { %928 = vst.msk [vmem:[#allocation2 + $0x38] sm:$0xff] %vm206_vm3, %v926_v58 }
0x1645   :  { %v936_v59 = vld [vmem:[#allocation2 + $0x38] sm:$0xff] }
0x1646   :  { %1448 = vmatmul.mubr.msk.f32.gmra.mxu1 %vm206_vm3, %v936_v59 }
0x1706   :  { %v1449_v60 = vpop.f32.mrf.mxu1 }
0x1707   :  { %v1074_v61 = vadd.f32 %v1449_v60, %v1791_v30 }
0x1708   :  { %v1068_v21 = vpop.f32.mrf.mxu1 }
0x1709   :  { %v1108_v62 = vand.u32 2147483647, %v1074_v61  ;;  %v1069_v63 = vadd.f32 %v1791_v30, %v1068_v21  ;;  %v1084_v16 = vmax.f32 %v1074_v61, 0.0  ;;  %vm1092_vm2 = vcmp.ne.f32.partialorder %v1074_v61, %v1074_v61 }
0x170b   :  { %v1116_v0 = vsub.f32 0.0, %v1108_v62  ;;  %v1107_v1 = vand.u32 2147483647, %v1069_v63  ;;  %v1083_v9 = vmax.f32 %v1069_v63, 0.0  ;;  %vm1091_vm3 = vcmp.ne.f32.partialorder %v1069_v63, %v1069_v63 }
0x170d   :  { %v1131_v22 = vmul.f32 1.442695, %v1116_v0  ;;  %v1115_v32 = vsub.f32 0.0, %v1107_v1 }
0x170f   :  { %1526 = vpow2.f32 %v1131_v22  ;;  %v1129_v2 = vmul.f32 1.442695, %v1115_v32 }
0x1711   :  { %1528 = vpow2.f32 %v1129_v2 }
0x171c   :  { %v1527_v24 = vpop.eup %1526 }
0x171d   :  { %v1196_v20 = vadd.f32 1.0, %v1527_v24  ;;  %v1199_v5 = vmul.f32 -0.5, %v1527_v24  ;;  %v1202_v8 = vand.u32 2147483647, %v1527_v24 }
0x171e   :  { %v1529_v39 = vpop.eup %1528 }
0x171f   :  { %1530 = vlog2.f32 %v1196_v20  ;;  %v1187_v27 = vadd.f32 1.0, %v1529_v39  ;;  %v1190_v6 = vmul.f32 -0.5, %v1529_v39  ;;  %v1200_v7 = vadd.f32 1.0, %v1199_v5 }
0x1720   :  { %v1193_v30 = vand.u32 2147483647, %v1529_v39  ;;  %vm1203_vm0 = vcmp.lt.f32.partialorder %v1202_v8, 0.0004427343 }
0x1721   :  { %1532 = vlog2.f32 %v1187_v27  ;;  %v1191_v10 = vadd.f32 1.0, %v1190_v6  ;;  %v1201_v14 = vmul.f32 %v1527_v24, %v1200_v7 }
0x1722   :  { %vm1194_vm1 = vcmp.lt.f32.partialorder %v1193_v30, 0.0004427343 }
0x1723   :  { %v1192_v18 = vmul.f32 %v1529_v39, %v1191_v10 }
0x172c   :  { %v1531_v12 = vpop.eup %1530 }
0x172d   :  { %v1198_v13 = vmul.f32 0.6931472, %v1531_v12 }
0x172e   :  { %v1533_v15 = vpop.eup %1532 }
0x172f   :  { %v1204_v17 = vsel %vm1203_vm0, %v1201_v14, %v1198_v13  ;;  %v1189_v42 = vmul.f32 0.6931472, %v1533_v15 }
0x1730   :  { %v1212_v19 = vadd.f32 %v1204_v17, %v1084_v16 }
0x1731   :  { %v1195_v46 = vsel %vm1194_vm1, %v1192_v18, %v1189_v42 }
0x1732   :  { %v1220_v11 = vsel %vm1092_vm2, %v1074_v61, %v1212_v19  ;;  %v1211_v23 = vadd.f32 %v1195_v46, %v1083_v9 }
0x1733   :  { %v1228_v25 = vadd.f32 1e-06, %v1220_v11 }
0x1734   :  { %v1219_v26 = vsel %vm1091_vm3, %v1069_v63, %v1211_v23 }
0x1735   :  { %1236 = vst [vmem:[%s1919_s6 + $0x38] sm:$0xff] %v1228_v25  ;;  %v1227_v28 = vadd.f32 1e-06, %v1219_v26 }
0x1737   :  { %1235 = vst [vmem:[%s1919_s6 + $0x30] sm:$0xff] %v1227_v28 }

</bundles_post_ra>
